<compile_context>
chip_gen: v7x
topology: tpu7x:2x2x1
jax: 0.10.0
libtpu: 0.0.40
codegen_flags: <defaults>
</compile_context>

<pallas_src>
import numpy as np
import jax
import jax.numpy as jnp
from jax import lax
from jax.experimental import pallas as pl
from jax.experimental.pallas import tpu as pltpu


def _convblock_kernel(x_ref, b_ref, eps_ref, o_ref):
    # x_ref:   (BT, H, W*C)    input rows, lane index = w*C + c           (bf16)
    # b_ref:   (3*W*C, W*OC)   banded conv weights, ky folded into K      (bf16)
    # eps_ref: (3, W*OC)       row0 BN scale, row1 BN shift, row2 PReLU alpha (f32)
    # o_ref:   (BT, H, W*OC)   fused conv+BN+PReLU output rows
    bt, h, wc = x_ref.shape
    woc = o_ref.shape[2]
    m = bt * h

    x = x_ref[...]                                              # (BT, H, WC)

    # Per-image row shifts for the ky = 0 / 2 taps; the zero row implements the
    # SAME padding along H and (being per-image, axis=1) cannot leak rows across
    # images inside the batched tile.  Padding along W already lives in b_ref.
    zrow = jnp.zeros((bt, 1, wc), x.dtype)
    x_up = jnp.concatenate([zrow, x[:, :-1, :]], axis=1)        # row h-1 (ky=0)
    x_dn = jnp.concatenate([x[:, 1:, :], zrow], axis=1)         # row h+1 (ky=2)

    # LHS with ky folded into the contraction axis: K = 3*W*C = 192.
    lhs = jnp.concatenate([x_up, x, x_dn], axis=2).reshape(m, 3 * wc)

    # Single MXU matmul per grid step: (M, 3*W*C) x (3*W*C, W*OC) -> (M, W*OC).
    y = jnp.dot(lhs, b_ref[...], preferred_element_type=jnp.float32)

    # Fused eval-mode BatchNorm + per-output-channel PReLU, all in f32.
    scale = eps_ref[0, :]
    shift = eps_ref[1, :]
    alpha = eps_ref[2, :]
    y = y * scale + shift
    y = jnp.where(y > 0, y, alpha * y)

    o_ref[...] = y.reshape(bt, h, woc).astype(o_ref.dtype)


def _pick_batch_tile(n, h, target_m=256, min_m=128):
    """Largest B_TILE dividing n with B_TILE*H <= target_m; prefer choices that
    also leave an even grid length >= 2 (keeps both v7x TensorCores busy)."""
    divisors = [d for d in range(1, n + 1) if n % d == 0]
    cands = [d for d in divisors if d * h <= target_m] or [1]
    best = max(cands)
    even = [d for d in cands if d * h >= min_m and (n // d) >= 2 and (n // d) % 2 == 0]
    if even:
        best = max(even)
    return best


def convblock_forward_rows(x_rows, w_oihw, bn_gamma, bn_beta, bn_mean, bn_var,
                           prelu_alpha, *, eps=1e-5, compute_dtype=jnp.bfloat16,
                           out_dtype=jnp.bfloat16, batch_tile=None):
    """ConvBlock forward on the lane-dense row layout.

    x_rows: (N, H, W*C) with lane index w*C + c.  Returns (N, H, W*OC) with lane
    index w*OC + oc -- feed this directly into the next ConvBlock to avoid
    per-layer NCHW transposes."""
    N, H, WC = x_rows.shape
    OC, C, KH, KW = w_oihw.shape
    assert (KH, KW) == (3, 3), "ConvBlock kernel assumes 3x3 / stride 1 / pad 1"
    assert WC % C == 0
    W = WC // C
    WOC = W * OC

    # Eval-mode BatchNorm folded to per-output-channel scale/shift; applied in
    # the f32 epilogue (NOT folded into the bf16 weights -> no quantization
    # amplification when running var is small).
    scale = bn_gamma.astype(jnp.float32) * lax.rsqrt(bn_var.astype(jnp.float32) + eps)
    shift = bn_beta.astype(jnp.float32) - bn_mean.astype(jnp.float32) * scale

    # Banded weight matrix with ky on the contraction axis:
    #   b[ky*W*C + wi*C + c, w*OC + oc] = sum_kx sel[kx, wi, w] * w[ky, kx, c, oc]
    # sel encodes SAME padding along W (out-of-range taps simply never appear).
    w_hwio = jnp.transpose(w_oihw.astype(jnp.float32), (2, 3, 1, 0))   # (3,3,C,OC)
    sel = np.zeros((3, W, W), np.float32)
    for kx in range(3):
        for w in range(W):
            wi = w + kx - 1
            if 0 <= wi < W:
                sel[kx, wi, w] = 1.0
    band = jnp.einsum('xvw,yxco->yvcwo', jnp.asarray(sel), w_hwio)     # (3,W,C,W,OC)
    b_mat = band.reshape(3 * WC, WOC).astype(compute_dtype)            # K = 192

    # Merged epilogue operand: one tiny constant DMA stream instead of three.
    epi = jnp.stack([jnp.tile(scale, W),
                     jnp.tile(shift, W),
                     jnp.tile(prelu_alpha.astype(jnp.float32), W)], axis=0)  # (3, WOC)

    bt = batch_tile if batch_tile is not None else _pick_batch_tile(N, H)
    assert N % bt == 0
    grid = (N // bt,)

    x_rows = x_rows.astype(compute_dtype)

    out = pl.pallas_call(
        _convblock_kernel,
        out_shape=jax.ShapeDtypeStruct((N, H, WOC), out_dtype),
        grid_spec=pltpu.PrefetchScalarGridSpec(
            num_scalar_prefetch=0,
            grid=grid,
            in_specs=[
                pl.BlockSpec((bt, H, WC), lambda n: (n, 0, 0)),
                pl.BlockSpec((3 * WC, WOC), lambda n: (0, 0)),     # weights: resident
                pl.BlockSpec((3, WOC), lambda n: (0, 0)),          # scale/shift/alpha
            ],
            out_specs=pl.BlockSpec((bt, H, WOC), lambda n: (n, 0, 0)),
        ),
        compiler_params=pltpu.CompilerParams(
            dimension_semantics=("parallel",)),                    # batch across TCs
    )(x_rows, b_mat, epi)
    return out


def convblock_forward(x_nchw, w_oihw, bn_gamma, bn_beta, bn_mean, bn_var,
                      prelu_alpha, *, eps=1e-5, compute_dtype=jnp.bfloat16,
                      out_dtype=jnp.bfloat16):
    """NCHW / PyTorch-interface wrapper (layout glue only -- prefer the rows API
    when stacking ConvBlocks)."""
    N, C, H, W = x_nchw.shape
    OC = w_oihw.shape[0]
    x_rows = jnp.transpose(x_nchw, (0, 2, 3, 1)).reshape(N, H, W * C)
    out = convblock_forward_rows(x_rows, w_oihw, bn_gamma, bn_beta, bn_mean,
                                 bn_var, prelu_alpha, eps=eps,
                                 compute_dtype=compute_dtype, out_dtype=out_dtype)
    return jnp.transpose(out.reshape(N, H, W, OC), (0, 3, 1, 2))       # NCHW


def _reference_forward(x_nchw, w_oihw, gamma, beta, mean, var, alpha,
                       *, eps=1e-5, compute_dtype=jnp.bfloat16):
    """Pure-JAX reference mirroring ConvBlock (eval-mode BN, same dtype policy)."""
    scale = gamma * lax.rsqrt(var.astype(jnp.float32) + eps)
    shift = beta - mean * scale
    w_hwio = jnp.transpose(w_oihw, (2, 3, 1, 0)).astype(compute_dtype)
    x_nhwc = jnp.transpose(x_nchw, (0, 2, 3, 1)).astype(compute_dtype)
    conv = lax.conv_general_dilated(
        x_nhwc, w_hwio, window_strides=(1, 1), padding="SAME",
        dimension_numbers=("NHWC", "HWIO", "NHWC"),
        preferred_element_type=jnp.float32)
    y = conv * scale + shift
    y = jnp.where(y > 0, y, alpha * y)             # PReLU, per-channel alpha
    return jnp.transpose(y, (0, 3, 1, 2))          # NCHW, f32


if __name__ == "__main__":
    # Small shapes consistent with the module: batch=2, in_c=4, out_c=16, spatial=16.
    N, C, H, W = 2, 4, 16, 16
    OC = 16

    key = jax.random.PRNGKey(0)
    kx_, kw_, kg, kb, km, kv, ka = jax.random.split(key, 7)

    x = jax.random.normal(kx_, (N, C, H, W), jnp.float32)
    w_oihw = jax.random.normal(kw_, (OC, C, 3, 3), jnp.float32) * 0.1   # PyTorch OIHW
    gamma = 1.0 + 0.1 * jax.random.normal(kg, (OC,), jnp.float32)
    beta = 0.1 * jax.random.normal(kb, (OC,), jnp.float32)
    mean = 0.1 * jax.random.normal(km, (OC,), jnp.float32)
    var = jax.random.uniform(kv, (OC,), jnp.float32, minval=0.5, maxval=1.5)
    alpha = 0.25 + 0.05 * jax.random.normal(ka, (OC,), jnp.float32)     # PReLU(out_c)

    out = convblock_forward(x, w_oihw, gamma, beta, mean, var, alpha)
    out = jax.block_until_ready(out)

    ref = _reference_forward(x, w_oihw, gamma, beta, mean, var, alpha)
    assert out.shape == (N, OC, H, W), out.shape
    # Kernel output is bf16 (perf feedback); compare against the f32 reference
    # with a tolerance covering the final bf16 rounding of the output.
    assert jnp.allclose(out.astype(jnp.float32), ref, atol=3e-2, rtol=3e-2), \
        float(jnp.max(jnp.abs(out.astype(jnp.float32) - ref)))

    print("KERNEL_OK")
</pallas_src>

<mosaic_0001>
module attributes {stable_mosaic.version = 11 : i64} {
  func.func @_convblock_kernel(%arg0: i32, %arg1: memref<2x16x64xbf16, #tpu.memory_space<vmem>>, %arg2: memref<192x256xbf16, #tpu.memory_space<vmem>>, %arg3: memref<3x256xf32, #tpu.memory_space<vmem>>, %arg4: memref<2x16x256xbf16, #tpu.memory_space<vmem>>) attributes {dimension_semantics = [#tpu.dimension_semantics<parallel>], iteration_bounds = array<i64: 1>, scalar_prefetch = 0 : i64, scratch_operands = 0 : i64, tpu.core_type = #tpu.core_type<tc>, window_params = [{transform_indices = @transform_0, window_bounds = array<i64: 2, 16, 64>}, {pipeline_mode = #tpu.pipeline_mode<synchronous>, transform_indices = @transform_1, window_bounds = array<i64: 192, 256>}, {pipeline_mode = #tpu.pipeline_mode<synchronous>, transform_indices = @transform_2, window_bounds = array<i64: 3, 256>}, {transform_indices = @transform_3, window_bounds = array<i64: 2, 16, 256>}]} {
    %c0 = arith.constant 0 : index
    %c0_0 = arith.constant 0 : index
    %c0_1 = arith.constant 0 : index
    %0 = vector.load %arg1[%c0, %c0_0, %c0_1] : memref<2x16x64xbf16, #tpu.memory_space<vmem>>, vector<2x16x64xbf16>
    %cst = arith.constant 0.000000e+00 : bf16
    %1 = vector.broadcast %cst : bf16 to vector<2x1x64xbf16>
    %2 = vector.extract_strided_slice %0 {offsets = [0, 0, 0], sizes = [2, 15, 64], strides = [1, 1, 1]} : vector<2x16x64xbf16> to vector<2x15x64xbf16>
    %3 = tpu.concatenate %1, %2 in 1 : vector<2x1x64xbf16>, vector<2x15x64xbf16> -> vector<2x16x64xbf16>
    %4 = vector.extract_strided_slice %0 {offsets = [0, 1, 0], sizes = [2, 15, 64], strides = [1, 1, 1]} : vector<2x16x64xbf16> to vector<2x15x64xbf16>
    %5 = tpu.concatenate %4, %1 in 1 : vector<2x15x64xbf16>, vector<2x1x64xbf16> -> vector<2x16x64xbf16>
    %6 = tpu.concatenate %3, %0, %5 in 2 : vector<2x16x64xbf16>, vector<2x16x64xbf16>, vector<2x16x64xbf16> -> vector<2x16x192xbf16>
    %7 = vector.shape_cast %6 : vector<2x16x192xbf16> to vector<32x192xbf16>
    %c0_2 = arith.constant 0 : index
    %c0_3 = arith.constant 0 : index
    %8 = vector.load %arg2[%c0_2, %c0_3] : memref<192x256xbf16, #tpu.memory_space<vmem>>, vector<192x256xbf16>
    %cst_4 = arith.constant dense<0.000000e+00> : vector<32x256xf32>
    %9 = tpu.matmul %7, %8, %cst_4 {dimension_numbers = #tpu.dot_dimension_numbers<[1], [0], [0], [1], [0, 0, 1, 1], [], []>} : vector<32x192xbf16>, vector<192x256xbf16>, vector<32x256xf32> -> vector<32x256xf32>
    %c0_5 = arith.constant 0 : index
    %c0_6 = arith.constant 0 : index
    %10 = vector.load %arg3[%c0_5, %c0_6] : memref<3x256xf32, #tpu.memory_space<vmem>>, vector<1x256xf32>
    %11 = vector.shape_cast %10 : vector<1x256xf32> to vector<256xf32>
    %c1 = arith.constant 1 : index
    %c0_7 = arith.constant 0 : index
    %12 = vector.load %arg3[%c1, %c0_7] : memref<3x256xf32, #tpu.memory_space<vmem>>, vector<1x256xf32>
    %13 = vector.shape_cast %12 : vector<1x256xf32> to vector<256xf32>
    %c2 = arith.constant 2 : index
    %c0_8 = arith.constant 0 : index
    %14 = vector.load %arg3[%c2, %c0_8] : memref<3x256xf32, #tpu.memory_space<vmem>>, vector<1x256xf32>
    %15 = vector.shape_cast %14 : vector<1x256xf32> to vector<256xf32>
    %16 = vector.shape_cast %11 : vector<256xf32> to vector<1x256xf32>
    %17 = vector.broadcast %16 : vector<1x256xf32> to vector<32x256xf32>
    %18 = arith.mulf %9, %17 : vector<32x256xf32>
    %19 = vector.shape_cast %13 : vector<256xf32> to vector<1x256xf32>
    %20 = vector.broadcast %19 : vector<1x256xf32> to vector<32x256xf32>
    %21 = arith.addf %18, %20 : vector<32x256xf32>
    %cst_9 = arith.constant 0.000000e+00 : f32
    %22 = vector.broadcast %cst_9 : f32 to vector<32x256xf32>
    %23 = arith.cmpf ogt, %21, %22 : vector<32x256xf32>
    %24 = vector.shape_cast %15 : vector<256xf32> to vector<1x256xf32>
    %25 = vector.broadcast %24 : vector<1x256xf32> to vector<32x256xf32>
    %26 = arith.mulf %25, %21 : vector<32x256xf32>
    %27 = arith.select %23, %21, %26 : vector<32x256xi1>, vector<32x256xf32>
    %28 = vector.shape_cast %27 : vector<32x256xf32> to vector<2x16x256xf32>
    %29 = arith.truncf %28 : vector<2x16x256xf32> to vector<2x16x256xbf16>
    %c0_10 = arith.constant 0 : index
    %c0_11 = arith.constant 0 : index
    %c0_12 = arith.constant 0 : index
    %30 = vector.load %arg4[%c0_10, %c0_11, %c0_12] : memref<2x16x256xbf16, #tpu.memory_space<vmem>>, vector<2x16x256xbf16>
    tpu.vector_store %arg4[%c0_10, %c0_11, %c0_12], %29 {strides = array<i32>} : memref<2x16x256xbf16, #tpu.memory_space<vmem>>, vector<2x16x256xbf16>,
    return
  }
  func.func @transform_0(%arg0: i32) -> (i32, i32, i32) {
    %c0_i32 = arith.constant 0 : i32
    %c0_i32_0 = arith.constant 0 : i32
    %c0_i32_1 = arith.constant 0 : i32
    return %arg0, %c0_i32, %c0_i32_0 : i32, i32, i32
  }
  func.func @transform_1(%arg0: i32) -> (i32, i32) {
    %c0_i32 = arith.constant 0 : i32
    %c0_i32_0 = arith.constant 0 : i32
    %c0_i32_1 = arith.constant 0 : i32
    return %c0_i32, %c0_i32_0 : i32, i32
  }
  func.func @transform_2(%arg0: i32) -> (i32, i32) {
    %c0_i32 = arith.constant 0 : i32
    %c0_i32_0 = arith.constant 0 : i32
    %c0_i32_1 = arith.constant 0 : i32
    return %c0_i32, %c0_i32_0 : i32, i32
  }
  func.func @transform_3(%arg0: i32) -> (i32, i32, i32) {
    %c0_i32 = arith.constant 0 : i32
    %c0_i32_0 = arith.constant 0 : i32
    %c0_i32_1 = arith.constant 0 : i32
    return %arg0, %c0_i32, %c0_i32_0 : i32, i32, i32
  }
}

</mosaic_0001>

<bundles_post_ra>
// kernel: tpu_custom_call.1
= control target key start
LH: loop header
LB: loop body
LE: loop exit
PB: predicated region body
PF: predicated region fallthrough
CT: control target
= control target key end

     0   :  { %8 = vsyncpa [#allocation3], 0  ;;  %s747_s0 = inlined_call_operand.hbm [shape: bf16[2,16,64], index: 0, kind: input, shape index: {}]   ;;  %s748_s1 = inlined_call_operand.hbm [shape: bf16[192,256], index: 1, kind: input, shape index: {}]   ;;  %s749_s2 = inlined_call_operand.hbm [shape: f32[3,256], index: 2, kind: input, shape index: {}]   ;;  %s750_s3 = inlined_call_operand.hbm [shape: bf16[2,16,256], index: 3, kind: output, shape index: {}]  }
   0x1   :  { %9 = vsyncpa [#allocation6], 0 }
   0x2   :  { %10 = vsyncpa [#allocation4], 0  ;;  %s641_s12 = smov [#allocation5]   ;;  %s547_s16 = scalar_lea.hbm %s748_s1, 3072 }
   0x3   :  { %s28_s13 = sshll.u32 %s641_s12, 4  ;;  %p548_p0 = scmp.ne.s32.totalorder %s748_s1, %s547_s16  ;;  %s29_s13 = int_to_ptr.vmem [resolvable:$true] %s28_s13 }
   0x4   :  { %p551_p1 = scmp.lt.u32.totalorder %s547_s16, %s748_s1 }
   0x6   :  { %p553_p2 = pnand %p551_p1, %p548_p0 }
   0x8   :  { %556 = shalt.err (!%p553_p2)
}
   0x9   :  { %s557_s21 = scalar_lea.vmem %s29_s13, 3072  ;;  %p562_p4 = scmp.lt.s32.totalorder %s29_s13, %s29_s13 }
   0xa   :  { %p558_p3 = scmp.ne.s32.totalorder %s29_s13, %s557_s21  ;;  %p563_p5 = scmp.lt.s32.totalorder %s557_s21, %s557_s21 }
   0xc   :  { %p564_p6 = por %p563_p5, %p562_p4 }
   0xe   :  { %p565_p7 = pnand %p564_p6, %p558_p3 }
  0x10   :  { %568 = shalt.err (!%p565_p7)
}
  0x11   :  { %s642_s22 = smov 128   ;;  %s643_s23 = smov 8  }
  0x12   :  { %34 = dma.hbm_to_vmem [thread:$0]  %s748_s1, 3072, %s29_s13, [#allocation6], %s642_s22, %s642_s22, %s643_s23  }
  0x13   :  { %s644_s26 = smov [#allocation2]   ;;  %s569_s30 = scalar_lea.hbm %s747_s0, 256 }
  0x14   :  { %s16_s27 = sshll.u32 %s644_s26, 4  ;;  %p570_p8 = scmp.ne.s32.totalorder %s747_s0, %s569_s30  ;;  %s17_s27 = int_to_ptr.vmem [resolvable:$true] %s16_s27 }
  0x15   :  { %p573_p9 = scmp.lt.u32.totalorder %s569_s30, %s747_s0 }
  0x17   :  { %p575_p10 = pnand %p573_p9, %p570_p8 }
  0x19   :  { %578 = shalt.err (!%p575_p10)
}
  0x1a   :  { %s579_s8 = scalar_lea.vmem %s17_s27, 256  ;;  %p584_p12 = scmp.lt.s32.totalorder %s17_s27, %s17_s27 }
  0x1b   :  { %p580_p11 = scmp.ne.s32.totalorder %s17_s27, %s579_s8  ;;  %p585_p13 = scmp.lt.s32.totalorder %s579_s8, %s579_s8 }
  0x1d   :  { %p586_p0 = por %p585_p13, %p584_p12 }
  0x1f   :  { %p587_p1 = pnand %p586_p0, %p580_p11 }
  0x21   :  { %590 = shalt.err (!%p587_p1)
}
  0x22   :  { %s645_s1 = smov 64   ;;  %s646_s9 = smov 4  }
  0x23   :  { %22 = dma.hbm_to_vmem [thread:$0]  %s747_s0, 256, %s17_s27, [#allocation3], %s645_s1, %s645_s1, %s646_s9  }
  0x24   :  { %s647_s12 = smov [#allocation7]   ;;  %s591_s16 = scalar_lea.hbm %s749_s2, 128 }
  0x25   :  { %s41_s13 = sshll.u32 %s647_s12, 4  ;;  %p592_p2 = scmp.ne.s32.totalorder %s749_s2, %s591_s16  ;;  %s42_s13 = int_to_ptr.vmem [resolvable:$true] %s41_s13 }
  0x26   :  { %p595_p3 = scmp.lt.u32.totalorder %s591_s16, %s749_s2 }
  0x28   :  { %p597_p4 = pnand %p595_p3, %p592_p2 }
  0x2a   :  { %600 = shalt.err (!%p597_p4)
}
  0x2b   :  { %s601_s21 = scalar_lea.vmem %s42_s13, 128  ;;  %p606_p6 = scmp.lt.s32.totalorder %s42_s13, %s42_s13 }
  0x2c   :  { %p602_p5 = scmp.ne.s32.totalorder %s42_s13, %s601_s21  ;;  %p607_p7 = scmp.lt.s32.totalorder %s601_s21, %s601_s21 }
  0x2e   :  { %p608_p8 = por %p607_p7, %p606_p6 }
  0x30   :  { %p609_p9 = pnand %p608_p8, %p602_p5 }
  0x32   :  { %612 = shalt.err (!%p609_p9)
}
  0x33   :  { %44 = dma.hbm_to_vmem [thread:$0]  %s749_s2, 128, %s42_s13, [#allocation6]  }
  0x34   :  { %635 = dma.done.wait [#allocation3], 256  }
  0x35   :  { %636 = vsyncadd [#allocation3], 4294967040 }
  0x36   :  { %637 = dma.done.wait [#allocation6], 3200  }
  0x37   :  { %638 = vsyncadd [#allocation6], 4294964096  ;;  %vm97_vm0 = vsmask.f32 7424  ;;  %v509_v0 = vld [vmem:[#allocation2] sm:$0xff]   ;;  %v510_v1 = vld [vmem:[#allocation2 + $0x8] sm:$0xff]   ;;  %v323_v47 = vlaneseq }
  0x38   :  { %vm96_vm1 = vcmask 1047552   ;;  %101 = vrot.lane.b32.xlu0 %v509_v0, %s645_s1  ;;  %v511_v2 = vld [vmem:[#allocation5 + $0x4] ss:$8 sps:$4 sm:$0xff]   ;;  %v70_v3 = vshrl.u32 %v509_v0, 16  ;;  %v73_v4 = vshll.u32 %v509_v0, 16  ;;  %v77_v6 = vshrl.u32 %v510_v1, 16 }
  0x39   :  { %v513_v5 = vld [vmem:[#allocation5] ss:$8 sps:$4 sm:$0xff]   ;;  %v80_v7 = vshll.u32 %v510_v1, 16  ;;  %264 = vmatprep.subr.bf16.mxu0 %v511_v2  ;;  %477 = vmatprep.subr.bf16.mxu1 %v511_v2  ;;  %v514_v8 = vld [vmem:[#allocation5 + $0x14] ss:$8 sps:$4 sm:$0xff]   ;;  %vm713_vm2 = vmand %vm96_vm1, %vm97_vm0  ;;  %vm105_vm3 = vcmask 523264  }
  0x3a   :  { %v72_v9 = vrot.slane %v70_v3, 7  ;;  %265 = vmatpush1.bf16.msra.mxu0 %v513_v5  ;;  %489 = vmatpush1.bf16.msra.mxu1 %v513_v5  ;;  %v516_v10 = vld [vmem:[#allocation5 + $0x10] ss:$8 sps:$4 sm:$0xff]   ;;  %v90_v11 = vrot.slane %v73_v4, 1  ;;  %v517_v13 = vld [vmem:[#allocation5 + $0x24] ss:$8 sps:$4 sm:$0xff]  }
  0x3b   :  { %266 = vmatprep.subr.bf16.mxu0 %v514_v8  ;;  %v79_v15 = vrot.slane %v77_v6, 7  ;;  %v92_v16 = vrot.slane %v80_v7, 1  ;;  %478 = vmatprep.subr.bf16.mxu1 %v514_v8  ;;  %v519_v20 = vld [vmem:[#allocation5 + $0x20] ss:$8 sps:$4 sm:$0xff]   ;;  %v520_v22 = vld [vmem:[#allocation5 + $0x34] ss:$8 sps:$4 sm:$0xff]  }
  0x3c   :  { %103 = vrot.lane.b32.xlu0 %v510_v1, %s645_s1  ;;  %v718_v14 = vor.u32 %v73_v4, %v72_v9  ;;  %v91_v17 = vor.u32 %v90_v11, %v70_v3  ;;  %v522_v24 = vld [vmem:[#allocation5 + $0x30] ss:$8 sps:$4 sm:$0xff]   ;;  %v523_v25 = vld [vmem:[#allocation5 + $0x44] ss:$8 sps:$4 sm:$0xff]   ;;  %v525_v26 = vld [vmem:[#allocation5 + $0x40] ss:$8 sps:$4 sm:$0xff]  }
  0x3d   :  { %v93_v18 = vor.u32 %v92_v16, %v77_v6  ;;  %v720_v19 = vor.u32 %v80_v7, %v79_v15  ;;  %v526_v27 = vld [vmem:[#allocation5 + $0x54] ss:$8 sps:$4 sm:$0xff]   ;;  %v528_v28 = vld [vmem:[#allocation5 + $0x50] ss:$8 sps:$4 sm:$0xff]   ;;  %v529_v29 = vld [vmem:[#allocation5 + $0x64] ss:$8 sps:$4 sm:$0xff]  }
  0x3e   :  { %267 = vmatpush1.bf16.msra.mxu0 %v516_v10  ;;  %490 = vmatpush1.bf16.msra.mxu1 %v516_v10  ;;  %v99_v21 = vsel %vm713_vm2, %v91_v17, 0  ;;  %v531_v30 = vld [vmem:[#allocation5 + $0x60] ss:$8 sps:$4 sm:$0xff]   ;;  %v532_v31 = vld [vmem:[#allocation5 + $0x74] ss:$8 sps:$4 sm:$0xff]   ;;  %vm85_vm4 = vcmask 1040384  }
  0x3f   :  { %268 = vmatprep.subr.bf16.mxu0 %v517_v13  ;;  %479 = vmatprep.subr.bf16.mxu1 %v517_v13  ;;  %v100_v23 = vsel %vm713_vm2, %v93_v18, 0  ;;  %v534_v32 = vld [vmem:[#allocation5 + $0x70] ss:$8 sps:$4 sm:$0xff]   ;;  %v535_v33 = vld [vmem:[#allocation5 + $0x84] ss:$8 sps:$4 sm:$0xff]   ;;  %v324_v48 = vshrl.u32 %v323_v47, 7 }
  0x40   :  { %467 = vmatprep.mubr.msk.bf16.mxu0 %vm105_vm3, %v99_v21  ;;  %468 = vmatprep.mubr.msk.bf16.mxu1 %vm105_vm3, %v100_v23  ;;  %v537_v34 = vld [vmem:[#allocation5 + $0x80] ss:$8 sps:$4 sm:$0xff]   ;;  %v538_v35 = vld [vmem:[#allocation5 + $0x94] ss:$8 sps:$4 sm:$0xff]   ;;  %v540_v36 = vld [vmem:[#allocation5 + $0x90] ss:$8 sps:$4 sm:$0xff]  }
  0x41   :  { %v541_v37 = vld [vmem:[#allocation5 + $0xa4] ss:$8 sps:$4 sm:$0xff]   ;;  %v543_v38 = vld [vmem:[#allocation5 + $0xa0] ss:$8 sps:$4 sm:$0xff]   ;;  %v544_v39 = vld [vmem:[#allocation5 + $0xb4] ss:$8 sps:$4 sm:$0xff]  }
  0x42   :  { %269 = vmatpush1.bf16.msra.mxu0 %v519_v20  ;;  %491 = vmatpush1.bf16.msra.mxu1 %v519_v20  ;;  %v546_v40 = vld [vmem:[#allocation5 + $0xb0] ss:$8 sps:$4 sm:$0xff]   ;;  %vm86_vm5 = vsmask.f32 256  ;;  %v325_v49 = vsub.s32 0, %v324_v48  ;;  %v329_v51 = vsub.s32 1, %v324_v48 }
  0x43   :  { %270 = vmatprep.subr.bf16.mxu0 %v520_v22  ;;  %480 = vmatprep.subr.bf16.mxu1 %v520_v22  ;;  %vm87_vm6 = vmand %vm85_vm4, %vm86_vm5  ;;  %v317_v50 = vld [vmem:[#allocation7] ss:$4 sm:$0x3]  ;;  %v319_v52 = vld [vmem:[#allocation7 + $0x1] ss:$4 sm:$0x3] }
  0x44   :  { %v88_v41 = vsel %vm87_vm6, 0, %v718_v14  ;;  %v89_v44 = vsel %vm87_vm6, 0, %v720_v19  ;;  %v326_v53 = vrot.slane %v317_v50, %v325_v49  ;;  %v321_v54 = vld [vmem:[#allocation7 + $0x2] ss:$4 sm:$0x3]  ;;  %v330_v55 = vrot.slane %v317_v50, %v329_v51  ;;  %s648_s2 = smov [#allocation8]  }
  0x45   :  { %v345_v56 = vrot.slane %v319_v52, %v325_v49  ;;  %v349_v58 = vrot.slane %v319_v52, %v329_v51  ;;  %v372_v60 = vrot.slane %v321_v54, %v325_v49  ;;  %v376_v63 = vrot.slane %v321_v54, %v329_v51  ;;  %s428_s25 = sshll.u32 %s648_s2, 4  ;;  %s429_s25 = int_to_ptr.vmem [resolvable:$true] %s428_s25 }
  0x46   :  { %271 = vmatpush1.bf16.msra.mxu0 %v522_v24  ;;  %492 = vmatpush1.bf16.msra.mxu1 %v522_v24  ;;  %s613_s26 = scalar_lea.vmem %s429_s25, 512  ;;  %p618_p11 = scmp.lt.s32.totalorder %s429_s25, %s429_s25 }
  0x47   :  { %272 = vmatprep.subr.bf16.mxu0 %v523_v25  ;;  %481 = vmatprep.subr.bf16.mxu1 %v523_v25  ;;  %p614_p10 = scmp.ne.s32.totalorder %s429_s25, %s613_s26  ;;  %p619_p12 = scmp.lt.s32.totalorder %s613_s26, %s613_s26 }
  0x49   :  { %p620_p13 = por %p619_p12, %p618_p11 }
  0x4a   :  { %273 = vmatpush1.bf16.msra.mxu0 %v525_v26  ;;  %493 = vmatpush1.bf16.msra.mxu1 %v525_v26 }
  0x4b   :  { %274 = vmatprep.subr.bf16.mxu0 %v526_v27  ;;  %482 = vmatprep.subr.bf16.mxu1 %v526_v27  ;;  %p621_p0 = pnand %p620_p13, %p614_p10 }
  0x4e   :  { %275 = vmatpush1.bf16.msra.mxu0 %v528_v28  ;;  %494 = vmatpush1.bf16.msra.mxu1 %v528_v28 }
  0x4f   :  { %276 = vmatprep.subr.bf16.mxu0 %v529_v29  ;;  %483 = vmatprep.subr.bf16.mxu1 %v529_v29 }
  0x52   :  { %277 = vmatpush1.bf16.msra.mxu0 %v531_v30  ;;  %495 = vmatpush1.bf16.msra.mxu1 %v531_v30 }
  0x53   :  { %278 = vmatprep.subr.bf16.mxu0 %v532_v31  ;;  %484 = vmatprep.subr.bf16.mxu1 %v532_v31 }
  0x56   :  { %279 = vmatpush1.bf16.msra.mxu0 %v534_v32  ;;  %496 = vmatpush1.bf16.msra.mxu1 %v534_v32 }
  0x57   :  { %280 = vmatprep.subr.bf16.mxu0 %v535_v33  ;;  %485 = vmatprep.subr.bf16.mxu1 %v535_v33 }
  0x5a   :  { %281 = vmatpush1.bf16.msra.mxu0 %v537_v34  ;;  %497 = vmatpush1.bf16.msra.mxu1 %v537_v34 }
  0x5b   :  { %282 = vmatprep.subr.bf16.mxu0 %v538_v35  ;;  %486 = vmatprep.subr.bf16.mxu1 %v538_v35 }
  0x5e   :  { %283 = vmatpush1.bf16.msra.mxu0 %v540_v36  ;;  %498 = vmatpush1.bf16.msra.mxu1 %v540_v36 }
  0x5f   :  { %284 = vmatprep.subr.bf16.mxu0 %v541_v37  ;;  %487 = vmatprep.subr.bf16.mxu1 %v541_v37 }
  0x62   :  { %285 = vmatpush1.bf16.msra.mxu0 %v543_v38  ;;  %499 = vmatpush1.bf16.msra.mxu1 %v543_v38 }
  0x63   :  { %286 = vmatprep.subr.bf16.mxu0 %v544_v39  ;;  %488 = vmatprep.subr.bf16.mxu1 %v544_v39 }
  0x66   :  { %287 = vmatpush1.bf16.msra.mxu0 %v546_v40  ;;  %500 = vmatpush1.bf16.msra.mxu1 %v546_v40 }
  0xaa   :  { %v102_v42 = vpop.permute.xlu0 %101 }
  0xab   :  { %v108_v43 = vsel %vm105_vm3, %v88_v41, %v102_v42 }
  0xac   :  { %297 = vmatmul.mubr.bf16.vlgmr.msra.gmra.mrb[0].mxu0 %v108_v43 }
  0xae   :  { %v104_v45 = vpop.permute.xlu0 %103 }
  0xaf   :  { %v112_v46 = vsel %vm105_vm3, %v89_v44, %v104_v45 }
  0xb0   :  { %307 = vmatmul.mubr.bf16.vlgmr.msra.gmra.mrb[0].mxu1 %v112_v46 }
 0x17f   :  { %v298_v57 = vpop.f32.mrb[0].mxu0 }
 0x180   :  { %v333_v59 = vmul.f32 %v326_v53, %v298_v57  ;;  %v300_v61 = vpop.f32.mrb[1].mxu0 }
 0x181   :  { %v334_v62 = vmul.f32 %v330_v55, %v300_v61  ;;  %v302_v0 = vpop.f32.mrb[2].mxu0 }
 0x182   :  { %v352_v1 = vadd.f32 %v345_v56, %v333_v59  ;;  %v335_v2 = vmul.f32 %v326_v53, %v302_v0  ;;  %v304_v3 = vpop.f32.mrb[3].mxu0 }
 0x183   :  { %v353_v4 = vadd.f32 %v349_v58, %v334_v62  ;;  %v336_v5 = vmul.f32 %v330_v55, %v304_v3  ;;  %v308_v6 = vpop.f32.mrb[0].mxu1 }
 0x184   :  { %vm360_vm7 = vcmp.gt.f32.partialorder %v352_v1, 0.0  ;;  %v379_v7 = vmul.f32 %v372_v60, %v352_v1  ;;  %v354_v8 = vadd.f32 %v345_v56, %v335_v2  ;;  %v337_v9 = vmul.f32 %v326_v53, %v308_v6  ;;  %v310_v10 = vpop.f32.mrb[1].mxu1 }
 0x185   :  { %vm361_vm8 = vcmp.gt.f32.partialorder %v353_v4, 0.0  ;;  %v380_v11 = vmul.f32 %v376_v63, %v353_v4  ;;  %v355_v12 = vadd.f32 %v349_v58, %v336_v5  ;;  %v338_v13 = vmul.f32 %v330_v55, %v310_v10  ;;  %v312_v14 = vpop.f32.mrb[2].mxu1 }
 0x186   :  { %v387_v15 = vsel %vm360_vm7, %v352_v1, %v379_v7  ;;  %vm362_vm9 = vcmp.gt.f32.partialorder %v354_v8, 0.0  ;;  %v381_v16 = vmul.f32 %v372_v60, %v354_v8  ;;  %v356_v17 = vadd.f32 %v345_v56, %v337_v9  ;;  %v314_v18 = vpop.f32.mrb[3].mxu1 }
 0x187   :  { %v388_v19 = vsel %vm361_vm8, %v353_v4, %v380_v11  ;;  %vm363_vm10 = vcmp.gt.f32.partialorder %v355_v12, 0.0  ;;  %v382_v20 = vmul.f32 %v376_v63, %v355_v12  ;;  %v357_v21 = vadd.f32 %v349_v58, %v338_v13 }
 0x188   :  { %v473_v22 = vpack.c.bf16 %v388_v19, %v387_v15  ;;  %v389_v23 = vsel %vm362_vm9, %v354_v8, %v381_v16  ;;  %vm364_vm11 = vcmp.gt.f32.partialorder %v356_v17, 0.0  ;;  %v383_v24 = vmul.f32 %v372_v60, %v356_v17 }
 0x189   :  { %v390_v25 = vsel %vm363_vm10, %v355_v12, %v382_v20  ;;  %vm365_vm12 = vcmp.gt.f32.partialorder %v357_v21, 0.0  ;;  %v384_v26 = vmul.f32 %v376_v63, %v357_v21  ;;  %v339_v27 = vmul.f32 %v326_v53, %v312_v14 }
 0x18a   :  { %419 = vst [vmem:[#allocation8] sm:$0xff] %v473_v22  ;;  %v474_v28 = vpack.c.bf16 %v390_v25, %v389_v23  ;;  %v391_v29 = vsel %vm364_vm11, %v356_v17, %v383_v24  ;;  %v340_v30 = vmul.f32 %v330_v55, %v314_v18 }
 0x18b   :  { %v392_v31 = vsel %vm365_vm12, %v357_v21, %v384_v26  ;;  %v358_v32 = vadd.f32 %v345_v56, %v339_v27 }
 0x18c   :  { %420 = vst [vmem:[#allocation8 + $0x8] sm:$0xff] %v474_v28  ;;  %v475_v33 = vpack.c.bf16 %v392_v31, %v391_v29  ;;  %v359_v34 = vadd.f32 %v349_v58, %v340_v30 }
 0x18d   :  { %vm366_vm13 = vcmp.gt.f32.partialorder %v358_v32, 0.0  ;;  %v385_v35 = vmul.f32 %v372_v60, %v358_v32 }
 0x18e   :  { %421 = vst [vmem:[#allocation8 + $0x10] sm:$0xff] %v475_v33  ;;  %vm367_vm14 = vcmp.gt.f32.partialorder %v359_v34, 0.0  ;;  %v386_v36 = vmul.f32 %v376_v63, %v359_v34 }
 0x18f   :  { %v393_v37 = vsel %vm366_vm13, %v358_v32, %v385_v35 }
 0x190   :  { %v394_v38 = vsel %vm367_vm14, %v359_v34, %v386_v36 }
 0x191   :  { %v476_v39 = vpack.c.bf16 %v394_v38, %v393_v37 }
 0x193   :  { %422 = vst [vmem:[#allocation8 + $0x18] sm:$0xff] %v476_v39 }
 0x194   :  { %624 = shalt.err (!%p621_p0)
}
 0x195   :  { %s625_s29 = scalar_lea.hbm %s750_s3, 512 }
 0x196   :  { %p626_p1 = scmp.ne.s32.totalorder %s750_s3, %s625_s29  ;;  %p629_p2 = scmp.lt.u32.totalorder %s625_s29, %s750_s3 }
 0x198   :  { %p631_p3 = pnand %p629_p2, %p626_p1 }
 0x19a   :  { %634 = shalt.err (!%p631_p3)
}
 0x19b   :  { %434 = dma.vmem_to_hbm [thread:$0]  %s429_s25, 512, %s750_s3, [#allocation4], %s642_s22, %s642_s22, %s643_s23  }
 0x19c   :  { %639 = dma.done.wait [#allocation4], 512  }
 0x19d   :  { %640 = vsyncadd [#allocation4], 4294966784 }
 0x19e   :  { %438 = vsyncpa [#allocation3], 1 }
 0x19f   :  { %439 = vsyncpa [#allocation6], 1 }
 0x1a0   :  { %440 = vsyncpa [#allocation4], 1 }

</bundles_post_ra>
